<compile_context>
chip_gen: v6e
topology: v6e:2x2x1
jax: 0.10.0
libtpu: 0.0.40
codegen_flags: <defaults>
</compile_context>

<pallas_src>
import math
import numpy as np

import jax
import jax.numpy as jnp
from jax.experimental import pallas as pl
from jax.experimental.pallas import tpu as pltpu


# ----------------------------------------------------------------- kernel ---

def _decoder_kernel(x_ref, att_h_ref, w2_h_ref, bias_h_ref, bns_ref, bnb_ref,
                    att7_ref, w27_ref, bias7_ref, wconv_ref, bconv_ref, o_ref):
    """Whole GCN_decoder forward for one batch element.

    Shapes (per grid step):
      x_ref      : (1, N, C*L)          channel-stacked input slab
      att_h_ref  : (NH, N, N)           hidden-layer graph attentions
      w2_h_ref   : (NH, C*L, C*L)       hidden-layer Kronecker weights wc (x) ws
      bias_h_ref : (NH, 1, C*L)         hidden-layer biases (tiled over channels)
      bns_ref    : (NH, N, C*L)         fused BN scale (eval mode), 2D layout
      bnb_ref    : (NH, N, C*L)         fused BN shift (eval mode), 2D layout
      att7_ref   : (N, N)               gc7 attention
      w27_ref    : (C*L, OC*L)          gc7 Kronecker weight
      bias7_ref  : (1, OC*L)            gc7 bias (tiled)
      wconv_ref  : (C*L, OC*L)          1x1-conv weight as Wconv (x) I_L
      bconv_ref  : (1, OC*L)            1x1-conv bias (repeated over seq)
      o_ref      : (1, N, OC*L)         output slab
    """
    x = x_ref[0]                                     # (N, C*L)
    num_hidden = att_h_ref.shape[0]
    num_stage = (num_hidden - 1) // 2

    def gc_bn_tanh(inp, k):
        # graph conv = node mix (MXU) + channel/seq mix (MXU, Kronecker weight)
        t = jnp.dot(att_h_ref[k], inp, preferred_element_type=jnp.float32)
        t = jnp.dot(t, w2_h_ref[k], preferred_element_type=jnp.float32)
        t = t + bias_h_ref[k]
        # fused eval-mode BatchNorm + tanh epilogue (VPU + EUP)
        return jnp.tanh(t * bns_ref[k] + bnb_ref[k])

    # gc1 -> bn1 -> tanh  (dropout = identity in eval)
    y = gc_bn_tanh(x, 0)

    # residual GC blocks, activation kept on-chip across stages
    for s in range(num_stage):
        t = gc_bn_tanh(y, 1 + 2 * s)
        t = gc_bn_tanh(t, 2 + 2 * s)
        y = t + y

    # gc7(y) + reshape_conv(x), fused
    out = jnp.dot(att7_ref[...], y, preferred_element_type=jnp.float32)
    out = jnp.dot(out, w27_ref[...], preferred_element_type=jnp.float32)
    out = out + bias7_ref[...]
    out = out + jnp.dot(x, wconv_ref[...], preferred_element_type=jnp.float32)
    out = out + bconv_ref[...]
    o_ref[0] = out


# ------------------------------------------------------------ param prep ----

def _prep_gc(p, C, L):
    """Fold (weight_c, weight_seq) into a single Kronecker weight, tile bias."""
    OC = p["weight_c"].shape[1]
    w2 = jnp.einsum("co,lm->clom", p["weight_c"], p["weight_seq"])
    w2 = w2.reshape(C * L, OC * L)                   # W2[c*L+l, oc*L+m] = wc[c,oc]*ws[l,m]
    bias = jnp.tile(p["bias"], (OC,)).reshape(1, OC * L)
    return p["att"], w2, bias


def _prep_bn(p, C, N, L, eps=1e-5):
    """Eval-mode BN scale/shift, re-laid-out to the (N, C*L) kernel layout."""
    inv_std = 1.0 / jnp.sqrt(p["var"] + eps)
    scale = (p["gamma"] * inv_std).reshape(C, N, L)
    shift = (p["beta"] - p["mean"] * p["gamma"] * inv_std).reshape(C, N, L)
    scale2d = jnp.transpose(scale, (1, 0, 2)).reshape(N, C * L)
    shift2d = jnp.transpose(shift, (1, 0, 2)).reshape(N, C * L)
    return scale2d, shift2d


# ---------------------------------------------------------------- wrapper ---

def gcn_decoder_forward(x, params):
    B, C, N, L = x.shape
    CL = C * L
    OC = params["gc7"]["weight_c"].shape[1]
    OCL = OC * L

    # channel-stacked 2D view: x2d[b, n, c*L + l] = x[b, c, n, l]
    x2d = jnp.transpose(x, (0, 2, 1, 3)).reshape(B, N, CL)

    # stack all hidden (C -> C) graph convs and their BN layers
    hidden_gcs = [params["gc1"]]
    hidden_bns = [params["bn1"]]
    for blk in params["gcbs"]:
        hidden_gcs += [blk["gc1"], blk["gc2"]]
        hidden_bns += [blk["bn1"], blk["bn2"]]

    att_h, w2_h, bias_h = [], [], []
    for p in hidden_gcs:
        a, w, b = _prep_gc(p, C, L)
        att_h.append(a); w2_h.append(w); bias_h.append(b)
    att_h = jnp.stack(att_h)                 # (NH, N, N)
    w2_h = jnp.stack(w2_h)                   # (NH, CL, CL)
    bias_h = jnp.stack(bias_h)               # (NH, 1, CL)

    bn_s, bn_b = [], []
    for p in hidden_bns:
        s, sh = _prep_bn(p, C, N, L)
        bn_s.append(s); bn_b.append(sh)
    bn_s = jnp.stack(bn_s)                   # (NH, N, CL)
    bn_b = jnp.stack(bn_b)                   # (NH, N, CL)

    att7, w27, bias7 = _prep_gc(params["gc7"], C, L)

    # 1x1 conv as a (CL, OCL) matmul weight: Wconv (x) I_L
    eye_l = jnp.eye(L, dtype=jnp.float32)
    wconv2 = jnp.einsum("oc,lm->clom", params["conv"]["weight"], eye_l).reshape(CL, OCL)
    bconv2 = jnp.repeat(params["conv"]["bias"], L).reshape(1, OCL)

    NH = att_h.shape[0]

    out2d = pl.pallas_call(
        _decoder_kernel,
        out_shape=jax.ShapeDtypeStruct((B, N, OCL), jnp.float32),
        grid=(B,),
        in_specs=[
            pl.BlockSpec((1, N, CL), lambda b: (b, 0, 0)),       # x2d
            pl.BlockSpec((NH, N, N), lambda b: (0, 0, 0)),       # att_h
            pl.BlockSpec((NH, CL, CL), lambda b: (0, 0, 0)),     # w2_h
            pl.BlockSpec((NH, 1, CL), lambda b: (0, 0, 0)),      # bias_h
            pl.BlockSpec((NH, N, CL), lambda b: (0, 0, 0)),      # bn scale
            pl.BlockSpec((NH, N, CL), lambda b: (0, 0, 0)),      # bn shift
            pl.BlockSpec((N, N), lambda b: (0, 0)),              # att7
            pl.BlockSpec((CL, OCL), lambda b: (0, 0)),           # w27
            pl.BlockSpec((1, OCL), lambda b: (0, 0)),            # bias7
            pl.BlockSpec((CL, OCL), lambda b: (0, 0)),           # wconv2
            pl.BlockSpec((1, OCL), lambda b: (0, 0)),            # bconv2
        ],
        out_specs=pl.BlockSpec((1, N, OCL), lambda b: (b, 0, 0)),
        compiler_params=pltpu.CompilerParams(
            dimension_semantics=("parallel",)),                  # batch across TCs on v7x
    )(x2d, att_h, w2_h, bias_h, bn_s, bn_b, att7, w27, bias7, wconv2, bconv2)

    # back to the PyTorch (B, OC, N, L) layout
    return jnp.transpose(out2d.reshape(B, N, OC, L), (0, 2, 1, 3))


# ------------------------------------------------------------- param setup --

def init_gc(key, in_c, out_c, node_n, seq_len):
    stdv = 1.0 / math.sqrt(node_n)
    k1, k2, k3, k4 = jax.random.split(key, 4)
    return dict(
        att=jax.random.uniform(k1, (node_n, node_n), jnp.float32, -stdv, stdv),
        weight_seq=jax.random.uniform(k2, (seq_len, seq_len), jnp.float32, -stdv, stdv),
        weight_c=jax.random.uniform(k3, (in_c, out_c), jnp.float32, -stdv, stdv),
        bias=jax.random.uniform(k4, (seq_len,), jnp.float32, -stdv, stdv),
    )


def init_bn(key, feat):
    k1, k2, k3, k4 = jax.random.split(key, 4)
    return dict(
        gamma=jax.random.uniform(k1, (feat,), jnp.float32, 0.8, 1.2),
        beta=jax.random.uniform(k2, (feat,), jnp.float32, -0.1, 0.1),
        mean=jax.random.uniform(k3, (feat,), jnp.float32, -0.1, 0.1),
        var=jax.random.uniform(k4, (feat,), jnp.float32, 0.8, 1.2),
    )


def init_conv(key, in_c, out_c):
    stdv = 1.0 / math.sqrt(in_c)
    k1, k2 = jax.random.split(key)
    return dict(
        weight=jax.random.uniform(k1, (out_c, in_c), jnp.float32, -stdv, stdv),
        bias=jax.random.uniform(k2, (out_c,), jnp.float32, -stdv, stdv),
    )


def init_params(key, in_c, out_c, node_n, seq_len, num_stage):
    keys = jax.random.split(key, 4 + 4 * num_stage)
    F = in_c * node_n * seq_len
    params = {
        "gc1": init_gc(keys[0], in_c, in_c, node_n, seq_len),
        "bn1": init_bn(keys[1], F),
        "gc7": init_gc(keys[2], in_c, out_c, node_n, seq_len),
        "conv": init_conv(keys[3], in_c, out_c),
        "gcbs": [],
    }
    for s in range(num_stage):
        k = keys[4 + 4 * s: 8 + 4 * s]
        params["gcbs"].append({
            "gc1": init_gc(k[0], in_c, in_c, node_n, seq_len),
            "bn1": init_bn(k[1], F),
            "gc2": init_gc(k[2], in_c, in_c, node_n, seq_len),
            "bn2": init_bn(k[3], F),
        })
    return params


# ----------------------------------------------------- pure-JAX reference ---

_HI = jax.lax.Precision.HIGHEST


def _gc_ref(x, p):
    support = jnp.matmul(p["att"], jnp.transpose(x, (0, 3, 2, 1)), precision=_HI)
    out_gcn = jnp.matmul(support, p["weight_c"], precision=_HI)
    out_fc = jnp.matmul(jnp.transpose(out_gcn, (0, 2, 3, 1)), p["weight_seq"], precision=_HI)
    out_fc = jnp.transpose(out_fc, (0, 2, 1, 3))
    return out_fc + p["bias"]


def _bn_tanh_ref(y, p, eps=1e-5):
    shape = y.shape
    y2 = y.reshape(shape[0], -1)
    y2 = (y2 - p["mean"]) / jnp.sqrt(p["var"] + eps) * p["gamma"] + p["beta"]
    return jnp.tanh(y2.reshape(shape))


def decoder_ref(x, params):
    y = _bn_tanh_ref(_gc_ref(x, params["gc1"]), params["bn1"])
    for blk in params["gcbs"]:
        t = _bn_tanh_ref(_gc_ref(y, blk["gc1"]), blk["bn1"])
        t = _bn_tanh_ref(_gc_ref(t, blk["gc2"]), blk["bn2"])
        y = t + y
    conv = jnp.einsum("oc,bcnl->bonl", params["conv"]["weight"], x, precision=_HI) \
        + params["conv"]["bias"][None, :, None, None]
    return _gc_ref(y, params["gc7"]) + conv


# --------------------------------------------------------------------------

if __name__ == "__main__":
    B, IN_C, OUT_C, NODE_N, SEQ_LEN, NUM_STAGE = 2, 4, 3, 22, 20, 1

    key = jax.random.PRNGKey(0)
    kx, kp = jax.random.split(key)
    x = jax.random.normal(kx, (B, IN_C, NODE_N, SEQ_LEN), jnp.float32)
    params = init_params(kp, IN_C, OUT_C, NODE_N, SEQ_LEN, NUM_STAGE)

    out = jax.jit(gcn_decoder_forward)(x, params)
    out = jax.block_until_ready(out)

    ref = decoder_ref(x, params)
    assert out.shape == (B, OUT_C, NODE_N, SEQ_LEN), out.shape
    # Tolerance covers MXU f32 matmul precision vs. the HIGHEST-precision reference.
    np.testing.assert_allclose(np.asarray(out), np.asarray(ref),
                               rtol=2e-2, atol=2e-2)
    print("KERNEL_OK")
</pallas_src>

<mosaic_0001>
module attributes {stable_mosaic.version = 11 : i64} {
  func.func @_decoder_kernel(%arg0: i32, %arg1: memref<1x22x80xf32, #tpu.memory_space<vmem>>, %arg2: memref<3x22x22xf32, #tpu.memory_space<vmem>>, %arg3: memref<3x80x80xf32, #tpu.memory_space<vmem>>, %arg4: memref<3x1x80xf32, #tpu.memory_space<vmem>>, %arg5: memref<3x22x80xf32, #tpu.memory_space<vmem>>, %arg6: memref<3x22x80xf32, #tpu.memory_space<vmem>>, %arg7: memref<22x22xf32, #tpu.memory_space<vmem>>, %arg8: memref<80x60xf32, #tpu.memory_space<vmem>>, %arg9: memref<1x60xf32, #tpu.memory_space<vmem>>, %arg10: memref<80x60xf32, #tpu.memory_space<vmem>>, %arg11: memref<1x60xf32, #tpu.memory_space<vmem>>, %arg12: memref<1x22x60xf32, #tpu.memory_space<vmem>>) attributes {dimension_semantics = [#tpu.dimension_semantics<parallel>], iteration_bounds = array<i64: 2>, scalar_prefetch = 0 : i64, scratch_operands = 0 : i64, tpu.core_type = #tpu.core_type<tc>, window_params = [{transform_indices = @transform_0, window_bounds = array<i64: 1, 22, 80>}, {pipeline_mode = #tpu.pipeline_mode<synchronous>, transform_indices = @transform_1, window_bounds = array<i64: 3, 22, 22>}, {pipeline_mode = #tpu.pipeline_mode<synchronous>, transform_indices = @transform_2, window_bounds = array<i64: 3, 80, 80>}, {pipeline_mode = #tpu.pipeline_mode<synchronous>, transform_indices = @transform_3, window_bounds = array<i64: 3, 1, 80>}, {pipeline_mode = #tpu.pipeline_mode<synchronous>, transform_indices = @transform_4, window_bounds = array<i64: 3, 22, 80>}, {pipeline_mode = #tpu.pipeline_mode<synchronous>, transform_indices = @transform_5, window_bounds = array<i64: 3, 22, 80>}, {pipeline_mode = #tpu.pipeline_mode<synchronous>, transform_indices = @transform_6, window_bounds = array<i64: 22, 22>}, {pipeline_mode = #tpu.pipeline_mode<synchronous>, transform_indices = @transform_7, window_bounds = array<i64: 80, 60>}, {pipeline_mode = #tpu.pipeline_mode<synchronous>, transform_indices = @transform_8, window_bounds = array<i64: 1, 60>}, {pipeline_mode = #tpu.pipeline_mode<synchronous>, transform_indices = @transform_9, window_bounds = array<i64: 80, 60>}, {pipeline_mode = #tpu.pipeline_mode<synchronous>, transform_indices = @transform_10, window_bounds = array<i64: 1, 60>}, {transform_indices = @transform_11, window_bounds = array<i64: 1, 22, 60>}]} {
    %c0 = arith.constant 0 : index
    %c0_0 = arith.constant 0 : index
    %c0_1 = arith.constant 0 : index
    %0 = vector.load %arg1[%c0, %c0_0, %c0_1] : memref<1x22x80xf32, #tpu.memory_space<vmem>>, vector<1x22x80xf32>
    %1 = vector.shape_cast %0 : vector<1x22x80xf32> to vector<22x80xf32>
    %c0_2 = arith.constant 0 : index
    %c0_3 = arith.constant 0 : index
    %c0_4 = arith.constant 0 : index
    %2 = vector.load %arg2[%c0_2, %c0_3, %c0_4] : memref<3x22x22xf32, #tpu.memory_space<vmem>>, vector<1x22x22xf32>
    %3 = vector.shape_cast %2 : vector<1x22x22xf32> to vector<22x22xf32>
    %cst = arith.constant dense<0.000000e+00> : vector<22x80xf32>
    %4 = tpu.matmul %3, %1, %cst {dimension_numbers = #tpu.dot_dimension_numbers<[1], [0], [0], [1], [0, 0, 1, 1], [], []>} : vector<22x22xf32>, vector<22x80xf32>, vector<22x80xf32> -> vector<22x80xf32>
    %c0_5 = arith.constant 0 : index
    %c0_6 = arith.constant 0 : index
    %c0_7 = arith.constant 0 : index
    %5 = vector.load %arg3[%c0_5, %c0_6, %c0_7] : memref<3x80x80xf32, #tpu.memory_space<vmem>>, vector<1x80x80xf32>
    %6 = vector.shape_cast %5 : vector<1x80x80xf32> to vector<80x80xf32>
    %cst_8 = arith.constant dense<0.000000e+00> : vector<22x80xf32>
    %7 = tpu.matmul %4, %6, %cst_8 {dimension_numbers = #tpu.dot_dimension_numbers<[1], [0], [0], [1], [0, 0, 1, 1], [], []>} : vector<22x80xf32>, vector<80x80xf32>, vector<22x80xf32> -> vector<22x80xf32>
    %c0_9 = arith.constant 0 : index
    %c0_10 = arith.constant 0 : index
    %c0_11 = arith.constant 0 : index
    %8 = vector.load %arg4[%c0_9, %c0_10, %c0_11] : memref<3x1x80xf32, #tpu.memory_space<vmem>>, vector<1x1x80xf32>
    %9 = vector.shape_cast %8 : vector<1x1x80xf32> to vector<1x80xf32>
    %10 = vector.broadcast %9 : vector<1x80xf32> to vector<22x80xf32>
    %11 = arith.addf %7, %10 : vector<22x80xf32>
    %c0_12 = arith.constant 0 : index
    %c0_13 = arith.constant 0 : index
    %c0_14 = arith.constant 0 : index
    %12 = vector.load %arg5[%c0_12, %c0_13, %c0_14] : memref<3x22x80xf32, #tpu.memory_space<vmem>>, vector<1x22x80xf32>
    %13 = vector.shape_cast %12 : vector<1x22x80xf32> to vector<22x80xf32>
    %14 = arith.mulf %11, %13 : vector<22x80xf32>
    %c0_15 = arith.constant 0 : index
    %c0_16 = arith.constant 0 : index
    %c0_17 = arith.constant 0 : index
    %15 = vector.load %arg6[%c0_15, %c0_16, %c0_17] : memref<3x22x80xf32, #tpu.memory_space<vmem>>, vector<1x22x80xf32>
    %16 = vector.shape_cast %15 : vector<1x22x80xf32> to vector<22x80xf32>
    %17 = arith.addf %14, %16 : vector<22x80xf32>
    %18 = math.tanh %17 : vector<22x80xf32>
    %c1 = arith.constant 1 : index
    %c0_18 = arith.constant 0 : index
    %c0_19 = arith.constant 0 : index
    %19 = vector.load %arg2[%c1, %c0_18, %c0_19] : memref<3x22x22xf32, #tpu.memory_space<vmem>>, vector<1x22x22xf32>
    %20 = vector.shape_cast %19 : vector<1x22x22xf32> to vector<22x22xf32>
    %cst_20 = arith.constant dense<0.000000e+00> : vector<22x80xf32>
    %21 = tpu.matmul %20, %18, %cst_20 {dimension_numbers = #tpu.dot_dimension_numbers<[1], [0], [0], [1], [0, 0, 1, 1], [], []>} : vector<22x22xf32>, vector<22x80xf32>, vector<22x80xf32> -> vector<22x80xf32>
    %c1_21 = arith.constant 1 : index
    %c0_22 = arith.constant 0 : index
    %c0_23 = arith.constant 0 : index
    %22 = vector.load %arg3[%c1_21, %c0_22, %c0_23] : memref<3x80x80xf32, #tpu.memory_space<vmem>>, vector<1x80x80xf32>
    %23 = vector.shape_cast %22 : vector<1x80x80xf32> to vector<80x80xf32>
    %cst_24 = arith.constant dense<0.000000e+00> : vector<22x80xf32>
    %24 = tpu.matmul %21, %23, %cst_24 {dimension_numbers = #tpu.dot_dimension_numbers<[1], [0], [0], [1], [0, 0, 1, 1], [], []>} : vector<22x80xf32>, vector<80x80xf32>, vector<22x80xf32> -> vector<22x80xf32>
    %c1_25 = arith.constant 1 : index
    %c0_26 = arith.constant 0 : index
    %c0_27 = arith.constant 0 : index
    %25 = vector.load %arg4[%c1_25, %c0_26, %c0_27] : memref<3x1x80xf32, #tpu.memory_space<vmem>>, vector<1x1x80xf32>
    %26 = vector.shape_cast %25 : vector<1x1x80xf32> to vector<1x80xf32>
    %27 = vector.broadcast %26 : vector<1x80xf32> to vector<22x80xf32>
    %28 = arith.addf %24, %27 : vector<22x80xf32>
    %c1_28 = arith.constant 1 : index
    %c0_29 = arith.constant 0 : index
    %c0_30 = arith.constant 0 : index
    %29 = vector.load %arg5[%c1_28, %c0_29, %c0_30] : memref<3x22x80xf32, #tpu.memory_space<vmem>>, vector<1x22x80xf32>
    %30 = vector.shape_cast %29 : vector<1x22x80xf32> to vector<22x80xf32>
    %31 = arith.mulf %28, %30 : vector<22x80xf32>
    %c1_31 = arith.constant 1 : index
    %c0_32 = arith.constant 0 : index
    %c0_33 = arith.constant 0 : index
    %32 = vector.load %arg6[%c1_31, %c0_32, %c0_33] : memref<3x22x80xf32, #tpu.memory_space<vmem>>, vector<1x22x80xf32>
    %33 = vector.shape_cast %32 : vector<1x22x80xf32> to vector<22x80xf32>
    %34 = arith.addf %31, %33 : vector<22x80xf32>
    %35 = math.tanh %34 : vector<22x80xf32>
    %c2 = arith.constant 2 : index
    %c0_34 = arith.constant 0 : index
    %c0_35 = arith.constant 0 : index
    %36 = vector.load %arg2[%c2, %c0_34, %c0_35] : memref<3x22x22xf32, #tpu.memory_space<vmem>>, vector<1x22x22xf32>
    %37 = vector.shape_cast %36 : vector<1x22x22xf32> to vector<22x22xf32>
    %cst_36 = arith.constant dense<0.000000e+00> : vector<22x80xf32>
    %38 = tpu.matmul %37, %35, %cst_36 {dimension_numbers = #tpu.dot_dimension_numbers<[1], [0], [0], [1], [0, 0, 1, 1], [], []>} : vector<22x22xf32>, vector<22x80xf32>, vector<22x80xf32> -> vector<22x80xf32>
    %c2_37 = arith.constant 2 : index
    %c0_38 = arith.constant 0 : index
    %c0_39 = arith.constant 0 : index
    %39 = vector.load %arg3[%c2_37, %c0_38, %c0_39] : memref<3x80x80xf32, #tpu.memory_space<vmem>>, vector<1x80x80xf32>
    %40 = vector.shape_cast %39 : vector<1x80x80xf32> to vector<80x80xf32>
    %cst_40 = arith.constant dense<0.000000e+00> : vector<22x80xf32>
    %41 = tpu.matmul %38, %40, %cst_40 {dimension_numbers = #tpu.dot_dimension_numbers<[1], [0], [0], [1], [0, 0, 1, 1], [], []>} : vector<22x80xf32>, vector<80x80xf32>, vector<22x80xf32> -> vector<22x80xf32>
    %c2_41 = arith.constant 2 : index
    %c0_42 = arith.constant 0 : index
    %c0_43 = arith.constant 0 : index
    %42 = vector.load %arg4[%c2_41, %c0_42, %c0_43] : memref<3x1x80xf32, #tpu.memory_space<vmem>>, vector<1x1x80xf32>
    %43 = vector.shape_cast %42 : vector<1x1x80xf32> to vector<1x80xf32>
    %44 = vector.broadcast %43 : vector<1x80xf32> to vector<22x80xf32>
    %45 = arith.addf %41, %44 : vector<22x80xf32>
    %c2_44 = arith.constant 2 : index
    %c0_45 = arith.constant 0 : index
    %c0_46 = arith.constant 0 : index
    %46 = vector.load %arg5[%c2_44, %c0_45, %c0_46] : memref<3x22x80xf32, #tpu.memory_space<vmem>>, vector<1x22x80xf32>
    %47 = vector.shape_cast %46 : vector<1x22x80xf32> to vector<22x80xf32>
    %48 = arith.mulf %45, %47 : vector<22x80xf32>
    %c2_47 = arith.constant 2 : index
    %c0_48 = arith.constant 0 : index
    %c0_49 = arith.constant 0 : index
    %49 = vector.load %arg6[%c2_47, %c0_48, %c0_49] : memref<3x22x80xf32, #tpu.memory_space<vmem>>, vector<1x22x80xf32>
    %50 = vector.shape_cast %49 : vector<1x22x80xf32> to vector<22x80xf32>
    %51 = arith.addf %48, %50 : vector<22x80xf32>
    %52 = math.tanh %51 : vector<22x80xf32>
    %53 = arith.addf %52, %18 : vector<22x80xf32>
    %c0_50 = arith.constant 0 : index
    %c0_51 = arith.constant 0 : index
    %54 = vector.load %arg7[%c0_50, %c0_51] : memref<22x22xf32, #tpu.memory_space<vmem>>, vector<22x22xf32>
    %cst_52 = arith.constant dense<0.000000e+00> : vector<22x80xf32>
    %55 = tpu.matmul %54, %53, %cst_52 {dimension_numbers = #tpu.dot_dimension_numbers<[1], [0], [0], [1], [0, 0, 1, 1], [], []>} : vector<22x22xf32>, vector<22x80xf32>, vector<22x80xf32> -> vector<22x80xf32>
    %c0_53 = arith.constant 0 : index
    %c0_54 = arith.constant 0 : index
    %56 = vector.load %arg8[%c0_53, %c0_54] : memref<80x60xf32, #tpu.memory_space<vmem>>, vector<80x60xf32>
    %cst_55 = arith.constant dense<0.000000e+00> : vector<22x60xf32>
    %57 = tpu.matmul %55, %56, %cst_55 {dimension_numbers = #tpu.dot_dimension_numbers<[1], [0], [0], [1], [0, 0, 1, 1], [], []>} : vector<22x80xf32>, vector<80x60xf32>, vector<22x60xf32> -> vector<22x60xf32>
    %c0_56 = arith.constant 0 : index
    %c0_57 = arith.constant 0 : index
    %58 = vector.load %arg9[%c0_56, %c0_57] : memref<1x60xf32, #tpu.memory_space<vmem>>, vector<1x60xf32>
    %59 = vector.broadcast %58 : vector<1x60xf32> to vector<22x60xf32>
    %60 = arith.addf %57, %59 : vector<22x60xf32>
    %c0_58 = arith.constant 0 : index
    %c0_59 = arith.constant 0 : index
    %61 = vector.load %arg10[%c0_58, %c0_59] : memref<80x60xf32, #tpu.memory_space<vmem>>, vector<80x60xf32>
    %cst_60 = arith.constant dense<0.000000e+00> : vector<22x60xf32>
    %62 = tpu.matmul %1, %61, %cst_60 {dimension_numbers = #tpu.dot_dimension_numbers<[1], [0], [0], [1], [0, 0, 1, 1], [], []>} : vector<22x80xf32>, vector<80x60xf32>, vector<22x60xf32> -> vector<22x60xf32>
    %63 = arith.addf %60, %62 : vector<22x60xf32>
    %c0_61 = arith.constant 0 : index
    %c0_62 = arith.constant 0 : index
    %64 = vector.load %arg11[%c0_61, %c0_62] : memref<1x60xf32, #tpu.memory_space<vmem>>, vector<1x60xf32>
    %65 = vector.broadcast %64 : vector<1x60xf32> to vector<22x60xf32>
    %66 = arith.addf %63, %65 : vector<22x60xf32>
    %c0_63 = arith.constant 0 : index
    %c0_64 = arith.constant 0 : index
    %c0_65 = arith.constant 0 : index
    %67 = vector.load %arg12[%c0_63, %c0_64, %c0_65] : memref<1x22x60xf32, #tpu.memory_space<vmem>>, vector<1x22x60xf32>
    %68 = vector.shape_cast %67 : vector<1x22x60xf32> to vector<22x60xf32>
    %69 = vector.shape_cast %66 : vector<22x60xf32> to vector<1x22x60xf32>
    tpu.vector_store %arg12[%c0_63, %c0_64, %c0_65], %69 {strides = array<i32>} : memref<1x22x60xf32, #tpu.memory_space<vmem>>, vector<1x22x60xf32>,
    return
  }
  func.func @transform_0(%arg0: i32) -> (i32, i32, i32) {
    %c0_i32 = arith.constant 0 : i32
    %c0_i32_0 = arith.constant 0 : i32
    %c0_i32_1 = arith.constant 0 : i32
    return %arg0, %c0_i32, %c0_i32_0 : i32, i32, i32
  }
  func.func @transform_1(%arg0: i32) -> (i32, i32, i32) {
    %c0_i32 = arith.constant 0 : i32
    %c0_i32_0 = arith.constant 0 : i32
    %c0_i32_1 = arith.constant 0 : i32
    %c0_i32_2 = arith.constant 0 : i32
    return %c0_i32, %c0_i32_0, %c0_i32_1 : i32, i32, i32
  }
  func.func @transform_2(%arg0: i32) -> (i32, i32, i32) {
    %c0_i32 = arith.constant 0 : i32
    %c0_i32_0 = arith.constant 0 : i32
    %c0_i32_1 = arith.constant 0 : i32
    %c0_i32_2 = arith.constant 0 : i32
    return %c0_i32, %c0_i32_0, %c0_i32_1 : i32, i32, i32
  }
  func.func @transform_3(%arg0: i32) -> (i32, i32, i32) {
    %c0_i32 = arith.constant 0 : i32
    %c0_i32_0 = arith.constant 0 : i32
    %c0_i32_1 = arith.constant 0 : i32
    %c0_i32_2 = arith.constant 0 : i32
    return %c0_i32, %c0_i32_0, %c0_i32_1 : i32, i32, i32
  }
  func.func @transform_4(%arg0: i32) -> (i32, i32, i32) {
    %c0_i32 = arith.constant 0 : i32
    %c0_i32_0 = arith.constant 0 : i32
    %c0_i32_1 = arith.constant 0 : i32
    %c0_i32_2 = arith.constant 0 : i32
    return %c0_i32, %c0_i32_0, %c0_i32_1 : i32, i32, i32
  }
  func.func @transform_5(%arg0: i32) -> (i32, i32, i32) {
    %c0_i32 = arith.constant 0 : i32
    %c0_i32_0 = arith.constant 0 : i32
    %c0_i32_1 = arith.constant 0 : i32
    %c0_i32_2 = arith.constant 0 : i32
    return %c0_i32, %c0_i32_0, %c0_i32_1 : i32, i32, i32
  }
  func.func @transform_6(%arg0: i32) -> (i32, i32) {
    %c0_i32 = arith.constant 0 : i32
    %c0_i32_0 = arith.constant 0 : i32
    %c0_i32_1 = arith.constant 0 : i32
    return %c0_i32, %c0_i32_0 : i32, i32
  }
  func.func @transform_7(%arg0: i32) -> (i32, i32) {
    %c0_i32 = arith.constant 0 : i32
    %c0_i32_0 = arith.constant 0 : i32
    %c0_i32_1 = arith.constant 0 : i32
    return %c0_i32, %c0_i32_0 : i32, i32
  }
  func.func @transform_8(%arg0: i32) -> (i32, i32) {
    %c0_i32 = arith.constant 0 : i32
    %c0_i32_0 = arith.constant 0 : i32
    %c0_i32_1 = arith.constant 0 : i32
    return %c0_i32, %c0_i32_0 : i32, i32
  }
  func.func @transform_9(%arg0: i32) -> (i32, i32) {
    %c0_i32 = arith.constant 0 : i32
    %c0_i32_0 = arith.constant 0 : i32
    %c0_i32_1 = arith.constant 0 : i32
    return %c0_i32, %c0_i32_0 : i32, i32
  }
  func.func @transform_10(%arg0: i32) -> (i32, i32) {
    %c0_i32 = arith.constant 0 : i32
    %c0_i32_0 = arith.constant 0 : i32
    %c0_i32_1 = arith.constant 0 : i32
    return %c0_i32, %c0_i32_0 : i32, i32
  }
  func.func @transform_11(%arg0: i32) -> (i32, i32, i32) {
    %c0_i32 = arith.constant 0 : i32
    %c0_i32_0 = arith.constant 0 : i32
    %c0_i32_1 = arith.constant 0 : i32
    return %arg0, %c0_i32, %c0_i32_0 : i32, i32, i32
  }
}

</mosaic_0001>

<bundles_post_ra>
// kernel: tile.23
= control target key start
LH: loop header
LB: loop body
LE: loop exit
PB: predicated region body
PF: predicated region fallthrough
CT: control target
= control target key end

     0   :  { %s22_s0 = inlined_call_operand.vmem [shape: f32[20], index: 0, kind: input, shape index: {}]   ;;  %s23_s1 = inlined_call_operand.vmem [shape: f32[4,20], index: 1, kind: output, shape index: {}]  }
   0x1   :  { %v4_v0 = vld [vmem:[%s22_s0] ss:$0 sm:$0xff] }
   0x2   :  { %5 = vst [vmem:[%s23_s1] sm:$0xf] %v4_v0 }

// kernel: tile.32
= control target key start
LH: loop header
LB: loop body
LE: loop exit
PB: predicated region body
PF: predicated region fallthrough
CT: control target
= control target key end

     0   :  { %vm8_vm0 = vcmask 162816   ;;  %s40_s8 = smov 20   ;;  %s41_s9 = smov 40   ;;  %vm14_vm1 = vcmask 654816   ;;  %vm20_vm2 = vcmask 490816   ;;  %vm26_vm3 = vcmask 326816   ;;  %s58_s0 = inlined_call_operand.vmem [shape: f32[4,20], index: 0, kind: input, shape index: {}]   ;;  %s59_s1 = inlined_call_operand.vmem [shape: f32[1,1,80], index: 1, kind: output, shape index: {}]  }
   0x1   :  { %v5_v0 = vld [vmem:[%s58_s0] sm:$0xf]  ;;  %s39_s0 = smov 60  }
   0x2   :  { %6 = vst [vmem:[#allocation1] sm:$0xf] %v5_v0 }
   0x9   :  { %v11_v1 = vld [vmem:[#allocation1 + $0x3] sm:$0x1]   ;;  %v23_v2 = vld [vmem:[#allocation1 + $0x1] sm:$0x1]   ;;  %v7_v3 = vld [vmem:[#allocation1] sm:$0x1]  }
   0xa   :  { %12 = vrot.lane.b32.xlu0 %v11_v1, %s39_s0  ;;  %24 = vrot.lane.b32.xlu1 %v23_v2, %s40_s8  ;;  %v17_v4 = vld [vmem:[#allocation1 + $0x2] sm:$0x1]   ;;  %9 = vst.msk [vmem:[#allocation0] sm:$0x1] %vm8_vm0, %v7_v3  }
   0xe   :  { %18 = vrot.lane.b32.xlu0 %v17_v4, %s41_s9 }
  0x7c   :  { %v13_v5 = vpop.permute.xlu0 %12   ;;  %v25_v6 = vpop.permute.xlu1 %24  }
  0x7d   :  { %15 = vst.msk [vmem:[#allocation0] sm:$0x1] %vm14_vm1, %v13_v5  }
  0x80   :  { %v19_v7 = vpop.permute.xlu0 %18  }
  0x81   :  { %21 = vst.msk [vmem:[#allocation0] sm:$0x1] %vm20_vm2, %v19_v7  }
  0x82   :  { %27 = vst.msk [vmem:[#allocation0] sm:$0x1] %vm26_vm3, %v25_v6  }
  0x89   :  { %v32_v8 = vld [vmem:[#allocation0] sm:$0x1] }
  0x8a   :  { %35 = vst [vmem:[%s59_s1] sm:$0x1] %v32_v8 }

// kernel: tile.38
= control target key start
LH: loop header
LB: loop body
LE: loop exit
PB: predicated region body
PF: predicated region fallthrough
CT: control target
= control target key end

     0   :  { %s22_s0 = inlined_call_operand.vmem [shape: f32[20], index: 0, kind: input, shape index: {}]   ;;  %s23_s1 = inlined_call_operand.vmem [shape: f32[3,20], index: 1, kind: output, shape index: {}]  }
   0x1   :  { %v4_v0 = vld [vmem:[%s22_s0] ss:$0 sm:$0xff] }
   0x2   :  { %5 = vst [vmem:[%s23_s1] sm:$0xf] %v4_v0 }

// kernel: gcn_decoder_forward.1
= control target key start
LH: loop header
LB: loop body
LE: loop exit
PB: predicated region body
PF: predicated region fallthrough
CT: control target
= control target key end

     0   :  { %s1904_s17 = smov 0   ;;  %s2354_s0 = inlined_call_operand.vmem [shape: f32[2,22,80], index: 0, kind: input, shape index: {}]   ;;  %s2355_s1 = inlined_call_operand.vmem [shape: f32[3,22,22], index: 1, kind: input, shape index: {}]   ;;  %s2356_s2 = inlined_call_operand.vmem [shape: f32[3,80,80], index: 2, kind: input, shape index: {}]   ;;  %s2357_s3 = inlined_call_operand.vmem [shape: f32[3,1,80], index: 3, kind: input, shape index: {}]   ;;  %s2358_s4 = inlined_call_operand.vmem [shape: f32[3,22,80], index: 4, kind: input, shape index: {}]   ;;  %s2359_s5 = inlined_call_operand.vmem [shape: f32[3,22,80], index: 5, kind: input, shape index: {}]   ;;  %s2360_s6 = inlined_call_operand.vmem [shape: f32[22,22], index: 6, kind: input, shape index: {}]   ;;  %s2361_s7 = inlined_call_operand.vmem [shape: f32[80,60], index: 7, kind: input, shape index: {}]   ;;  %s2362_s8 = inlined_call_operand.vmem [shape: f32[1,60], index: 8, kind: input, shape index: {}]   ;;  %s2363_s9 = inlined_call_operand.vmem [shape: f32[80,60], index: 9, kind: input, shape index: {}]   ;;  %s2364_s10 = inlined_call_operand.vmem [shape: f32[1,60], index: 10, kind: input, shape index: {}]   ;;  %s2365_s11 = inlined_call_operand.vmem [shape: f32[2,22,60], index: 11, kind: output, shape index: {}]  }
   0x1 LB: > { %s1426_s18 = sadd.s32 4294967295, %s1840_s17   ;;  %p1430_p0 = scmp.ge.s32.totalorder %s1840_s17, 1  ;;  %s1840_s17 = sphi %s1904_s17, %s21_s17  }
   0x2   : > { %p337_p1 = scmp.lt.s32.totalorder %s1840_s17, 3 }
   0x4   : > { %p338_p2 = pnand %p1430_p0, %p337_p1 }
   0x5   : > { %p377_p3 = scmp.lt.s32.totalorder (!%p338_p2), %s1426_s18, 1 }
   0x6   : > { %341 = sbr.rel (%p338_p2) target bundleno = 1681 (0x691), region = 64 }
   0xb   : > { %v1842_v0 = vmov 0.0   ;;  %vm1843_vm0 = vmmov 0   ;;  %v496_v1 = vld [vmem:[%s2356_s2 + $0x48] sm:$0xff]  ;;  %s2367_s18 = smov (!%p377_p3, %s1426_s18), 1  ;;  %v495_v2 = vld [vmem:[%s2356_s2 + $0x40] sm:$0xff]  ;;  %v494_v3 = vld [vmem:[%s2356_s2 + $0x38] sm:$0xff] }
   0xc   : > { %1600 = vmatprep.subr.mxu0 %v1842_v0  ;;  %1606 = vmatprep.mubr.msk.f32.mxu0 %vm1843_vm0, %v1842_v0  ;;  %s1805_s23 = smul.u32 24, %s2367_s18  ;;  %vm403_vm1 = vcmask 1045504   ;;  %v493_v4 = vld [vmem:[%s2356_s2 + $0x30] sm:$0xff]  ;;  %v492_v7 = vld [vmem:[%s2356_s2 + $0x28] sm:$0xff]  ;;  %v390_v9 = vld [vmem:[%s2355_s1] sm:$0xff]  ;;  %vm393_vm2 = vcmask 179200  }
   0xd   : > { %1615 = vmatprep.subr.mxu1 %v1842_v0  ;;  %1635 = vmatprep.mubr.msk.f32.mxu1 %vm1843_vm0, %v1842_v0  ;;  %v491_v10 = vld [vmem:[%s2356_s2 + $0x20] sm:$0xff]  ;;  %v490_v11 = vld [vmem:[%s2356_s2 + $0x18] sm:$0xff]  ;;  %v391_v12 = vld [vmem:[%s2355_s1 + $0x8] sm:$0xff]  ;;  %vm504_vm3 = vcmask 654336   ;;  %vm1366_vm4 = vcmask 490496   ;;  %vm1369_vm5 = vcmask 488448  }
   0xe   : > { %1616 = vmatpush3.msra.mxu1 %v496_v1  ;;  %s381_s28 = scalar_lea.vmem %s2354_s0, %s1805_s23  ;;  %v489_v13 = vld [vmem:[%s2356_s2 + $0x10] sm:$0xff]  ;;  %v488_v14 = vld [vmem:[%s2356_s2 + $0x8] sm:$0xff]  ;;  %v487_v16 = vld [vmem:[%s2356_s2] sm:$0xff]  ;;  %s386_s16 = scalar_lea.vmem %s2365_s11, %s1805_s23 }
   0xf   : > { %1617 = vmatprep.subr.mxu1 %v1842_v0  ;;  %v1940_v5 = vld [vmem:[%s381_s28 + $0x10] sm:$0x3f]  ;;  %v1942_v6 = vld [vmem:[%s381_s28 + $0x8] sm:$0xff]  ;;  %v1951_v8 = vld [vmem:[%s381_s28] sm:$0xff] }
  0x10   : > { %1618 = vmatpush3.msra.mxu1 %v495_v2  ;;  %1601 = vmatpush3.msk.msra.mxu0 %vm403_vm1, %v1940_v5  ;;  %v392_v15 = vld [vmem:[%s2355_s1 + $0x10] sm:$0x3f]  ;;  %v1437_v25 = vld [vmem:[%s2357_s3] ss:$0 sm:$0xff]  ;;  %v595_v28 = vld [vmem:[%s2358_s4 + $0x8] sm:$0xff] }
  0x11   : > { %1619 = vmatprep.subr.mxu1 %v1842_v0  ;;  %1602 = vmatprep.subr.mxu0 %v1842_v0  ;;  %v594_v31 = vld [vmem:[%s2358_s4] sm:$0xff]  ;;  %v596_v33 = vld [vmem:[%s2358_s4 + $0x10] sm:$0x3f]  ;;  %v601_v36 = vld [vmem:[%s2359_s5 + $0x8] sm:$0xff] }
  0x12   : > { %1620 = vmatpush3.msra.mxu1 %v494_v3  ;;  %1603 = vmatpush3.msra.mxu0 %v1942_v6  ;;  %v602_v37 = vld [vmem:[%s2359_s5 + $0x10] sm:$0x3f]  ;;  %v600_v41 = vld [vmem:[%s2359_s5] sm:$0xff]  ;;  %v1441_v47 = vld [vmem:[%s2355_s1 + $0x18] sm:$0xff] }
  0x13   : > { %1621 = vmatprep.subr.mxu1 %v1842_v0  ;;  %1604 = vmatprep.subr.mxu0 %v1842_v0  ;;  %v1457_v49 = vld [vmem:[%s2356_s2 + $0x98] sm:$0xff]  ;;  %v1456_v50 = vld [vmem:[%s2356_s2 + $0x90] sm:$0xff]  ;;  %v1442_v51 = vld [vmem:[%s2355_s1 + $0x20] sm:$0xff] }
  0x14   : > { %1622 = vmatpush3.msra.mxu1 %v493_v4  ;;  %1605 = vmatpush3.msra.mxu0 %v1951_v8  ;;  %v1455_v52 = vld [vmem:[%s2356_s2 + $0x88] sm:$0xff]  ;;  %v1454_v53 = vld [vmem:[%s2356_s2 + $0x80] sm:$0xff]  ;;  %v1453_v55 = vld [vmem:[%s2356_s2 + $0x78] sm:$0xff] }
  0x15   : > { %1623 = vmatprep.subr.mxu1 %v1842_v0  ;;  %1607 = vmatmul.mubr.msk.f32.vlgmr.msra.gmra.mxu0 %vm393_vm2, %v390_v9  ;;  %v1443_v54 = vld [vmem:[%s2355_s1 + $0x28] sm:$0x3f]  ;;  %v1452_v56 = vld [vmem:[%s2356_s2 + $0x70] sm:$0xff]  ;;  %v1450_v58 = vld [vmem:[%s2356_s2 + $0x60] sm:$0xff] }
  0x16   : > { %1624 = vmatpush3.msra.mxu1 %v492_v7  ;;  %1609 = vmatprep.mubr.msk.f32.mxu0 %vm1843_vm0, %v1842_v0  ;;  %v1451_v57 = vld [vmem:[%s2356_s2 + $0x68] sm:$0xff]  ;;  %v1449_v59 = vld [vmem:[%s2356_s2 + $0x58] sm:$0xff]  ;;  %v1448_v60 = vld [vmem:[%s2356_s2 + $0x50] sm:$0xff] }
  0x17   : > { %1625 = vmatprep.subr.mxu1 %v1842_v0  ;;  %1644 = vmatprep.subr.mxu0 %v1842_v0  ;;  %v1459_v9 = vld [vmem:[%s2357_s3 + $0x1] ss:$0 sm:$0xff] }
  0x18   : > { %1626 = vmatpush3.msra.mxu1 %v491_v10 }
  0x19   : > { %1627 = vmatprep.subr.mxu1 %v1842_v0  ;;  %1610 = vmatmul.mubr.msk.f32.gmra.mxu0 %vm393_vm2, %v391_v12  ;;  %v1464_v12 = vld [vmem:[%s2358_s4 + $0x20] sm:$0xff] }
  0x1a   : > { %1628 = vmatpush3.msra.mxu1 %v490_v11  ;;  %1612 = vmatprep.mubr.msk.f32.mxu0 %vm1843_vm0, %v1842_v0 }
  0x1b   : > { %1629 = vmatprep.subr.mxu1 %v1842_v0 }
  0x1c   : > { %1630 = vmatpush3.msra.mxu1 %v489_v13 }
  0x1d   : > { %1631 = vmatprep.subr.mxu1 %v1842_v0  ;;  %1613 = vmatmul.mubr.msk.f32.gmra.mxu0 %vm393_vm2, %v392_v15  ;;  %v1463_v15 = vld [vmem:[%s2358_s4 + $0x18] sm:$0xff] }
  0x1e   : > { %1632 = vmatpush3.msra.mxu1 %v488_v14  ;;  %1650 = vmatprep.mubr.msk.f32.mxu0 %vm1843_vm0, %v1842_v0 }
  0x1f   : > { %1633 = vmatprep.subr.mxu1 %v1842_v0 }
  0x20   : > { %1634 = vmatpush3.msra.mxu1 %v487_v16 }
  0x21   : > { %1688 = vmatprep.subr.mxu1 %v1842_v0 }
  0xd5   : > { %v473_v17 = vpop.f32.mrf.mxu0 }
  0xd6   : > { %1636 = vmatmul.mubr.msk.f32.vlgmr.msra.gmra.mxu1 %vm504_vm3, %v473_v17  ;;  %v1465_v17 = vld [vmem:[%s2358_s4 + $0x28] sm:$0x3f] }
  0xd7   : > { %v1608_v18 = vpop.f32.mrf.mxu0  ;;  %1638 = vmatprep.mubr.msk.f32.mxu1 %vm1843_vm0, %v1842_v0 }
  0xd9   : > { %v478_v19 = vpop.f32.mrf.mxu0 }
  0xda   : > { %1639 = vmatmul.mubr.msk.f32.gmra.mxu1 %vm504_vm3, %v478_v19 }
  0xdb   : > { %v1611_v20 = vpop.f32.mrf.mxu0  ;;  %1641 = vmatprep.mubr.msk.f32.mxu1 %vm1843_vm0, %v1842_v0 }
  0xdc   : > { %v1467_v20 = vld [vmem:[%s2359_s5 + $0x20] sm:$0xff] }
  0xdd   : > { %v483_v21 = vpop.f32.mrf.mxu0 }
  0xde   : > { %1642 = vmatmul.mubr.msk.f32.gmra.mxu1 %vm504_vm3, %v483_v21  ;;  %v1468_v21 = vld [vmem:[%s2359_s5 + $0x28] sm:$0x3f] }
  0xdf   : > { %v1614_v22 = vpop.f32.mrf.mxu0  ;;  %1694 = vmatprep.mubr.msk.f32.mxu1 %vm1843_vm0, %v1842_v0 }
 0x196   : > { %v580_v23 = vpop.f32.mrf.mxu1 }
 0x197   : > { %v581_v30 = vadd.f32 %v1437_v25, %v580_v23 }
 0x198   : > { %v1637_v24 = vpop.f32.mrf.mxu1 }
 0x199   : > { %v597_v39 = vmul.f32 %v594_v31, %v581_v30  ;;  %v1469_v31 = vld [vmem:[%s2355_s1 + $0x30] sm:$0xff] }
 0x19a   : > { %v585_v26 = vpop.f32.mrf.mxu1 }
 0x19b   : > { %v586_v27 = vadd.f32 %v1437_v25, %v585_v26  ;;  %v603_v44 = vadd.f32 %v600_v41, %v597_v39  ;;  %v1481_v39 = vld [vmem:[%s2356_s2 + $0xc8] sm:$0xff]  ;;  %v1479_v41 = vld [vmem:[%s2356_s2 + $0xb8] sm:$0xff] }
 0x19c   : > { %v1640_v29 = vpop.f32.mrf.mxu1 }
 0x19d   : > { %v598_v34 = vmul.f32 %v595_v28, %v586_v27 }
 0x19e   : > { %v590_v32 = vpop.f32.mrf.mxu1 }
 0x19f   : > { %v591_v35 = vadd.f32 %v1437_v25, %v590_v32  ;;  %v604_v42 = vadd.f32 %v601_v36, %v598_v34  ;;  %v1466_v25 = vld [vmem:[%s2359_s5 + $0x18] sm:$0xff]  ;;  %v1484_v34 = vld [vmem:[%s2356_s2 + $0xe0] sm:$0xff] }
 0x1a0   : > { %v1643_v38 = vpop.f32.mrf.mxu1  ;;  %v1483_v36 = vld [vmem:[%s2356_s2 + $0xd8] sm:$0xff] }
 0x1a1   : > { %v599_v40 = vmul.f32 %v596_v33, %v591_v35  ;;  %v1485_v33 = vld [vmem:[%s2356_s2 + $0xe8] sm:$0xff]  ;;  %v1470_v35 = vld [vmem:[%s2355_s1 + $0x38] sm:$0xff]  ;;  %v1471_v38 = vld [vmem:[%s2355_s1 + $0x40] sm:$0x3f] }
 0x1a3   : > { %v605_v43 = vadd.f32 %v602_v37, %v599_v40  ;;  %v1482_v37 = vld [vmem:[%s2356_s2 + $0xd0] sm:$0xff]  ;;  %v1480_v40 = vld [vmem:[%s2356_s2 + $0xc0] sm:$0xff] }
 0x1a5   : > { %1816 = vtanh.f32 %v605_v43  ;;  %v1477_v43 = vld [vmem:[%s2356_s2 + $0xa8] sm:$0xff] }
 0x1a6   : > { %1818 = vtanh.f32 %v604_v42  ;;  %v1478_v42 = vld [vmem:[%s2356_s2 + $0xb0] sm:$0xff] }
 0x1a7   : > { %1820 = vtanh.f32 %v603_v44  ;;  %v1476_v44 = vld [vmem:[%s2356_s2 + $0xa0] sm:$0xff] }
 0x1b2   : > { %v2027_v45 = vpop.eup %1816 }
 0x1b3   : > { %1645 = vmatpush3.msk.msra.mxu0 %vm403_vm1, %v2027_v45  ;;  %v2031_v46 = vpop.eup %1818 }
 0x1b4   : > { %1646 = vmatprep.subr.mxu0 %v1842_v0  ;;  %v2038_v48 = vpop.eup %1820 }
 0x1b5   : > { %1647 = vmatpush3.msra.mxu0 %v2031_v46 }
 0x1b6   : > { %1648 = vmatprep.subr.mxu0 %v1842_v0 }
 0x1b7   : > { %1649 = vmatpush3.msra.mxu0 %v2038_v48 }
 0x1b8   : > { %1651 = vmatmul.mubr.msk.f32.vlgmr.msra.gmra.mxu0 %vm393_vm2, %v1441_v47  ;;  %1659 = vmatprep.subr.mxu0 %v1842_v0 }
 0x1b9   : > { %1653 = vmatprep.mubr.msk.f32.mxu0 %vm1843_vm0, %v1842_v0  ;;  %1660 = vmatpush3.msra.mxu0 %v1457_v49 }
 0x1ba   : > { %1661 = vmatprep.subr.mxu0 %v1842_v0 }
 0x1bb   : > { %1662 = vmatpush3.msra.mxu0 %v1456_v50 }
 0x1bc   : > { %1654 = vmatmul.mubr.msk.f32.gmra.mxu0 %vm393_vm2, %v1442_v51  ;;  %1663 = vmatprep.subr.mxu0 %v1842_v0 }
 0x1bd   : > { %1656 = vmatprep.mubr.msk.f32.mxu0 %vm1843_vm0, %v1842_v0  ;;  %1664 = vmatpush3.msra.mxu0 %v1455_v52 }
 0x1be   : > { %1665 = vmatprep.subr.mxu0 %v1842_v0 }
 0x1bf   : > { %1666 = vmatpush3.msra.mxu0 %v1454_v53 }
 0x1c0   : > { %1657 = vmatmul.mubr.msk.f32.gmra.mxu0 %vm393_vm2, %v1443_v54  ;;  %1667 = vmatprep.subr.mxu0 %v1842_v0  ;;  %v1264_v54 = vld [vmem:[%s2363_s9 + $0x48] sm:$0xff] }
 0x1c1   : > { %1668 = vmatpush3.msra.mxu0 %v1453_v55  ;;  %1679 = vmatprep.mubr.msk.f32.mxu0 %vm1843_vm0, %v1842_v0  ;;  %v1263_v55 = vld [vmem:[%s2363_s9 + $0x40] sm:$0xff] }
 0x1c2   : > { %1669 = vmatprep.subr.mxu0 %v1842_v0 }
 0x1c3   : > { %1670 = vmatpush3.msra.mxu0 %v1452_v56  ;;  %v1262_v56 = vld [vmem:[%s2363_s9 + $0x38] sm:$0xff] }
 0x1c4   : > { %1671 = vmatprep.subr.mxu0 %v1842_v0 }
 0x1c5   : > { %1672 = vmatpush3.msra.mxu0 %v1451_v57  ;;  %v1261_v57 = vld [vmem:[%s2363_s9 + $0x30] sm:$0xff] }
 0x1c6   : > { %1673 = vmatprep.subr.mxu0 %v1842_v0 }
 0x1c7   : > { %1674 = vmatpush3.msra.mxu0 %v1450_v58  ;;  %v1260_v58 = vld [vmem:[%s2363_s9 + $0x28] sm:$0xff] }
 0x1c8   : > { %1675 = vmatprep.subr.mxu0 %v1842_v0 }
 0x1c9   : > { %1676 = vmatpush3.msra.mxu0 %v1449_v59  ;;  %v1259_v59 = vld [vmem:[%s2363_s9 + $0x20] sm:$0xff] }
 0x1ca   : > { %1677 = vmatprep.subr.mxu0 %v1842_v0 }
 0x1cb   : > { %1678 = vmatpush3.msra.mxu0 %v1448_v60  ;;  %v1258_v60 = vld [vmem:[%s2363_s9 + $0x18] sm:$0xff] }
 0x1cc   : > { %1732 = vmatprep.subr.mxu0 %v1842_v0 }
 0x278   : > { %v691_v61 = vpop.f32.mrf.mxu0 }
 0x279   : > { %1680 = vmatmul.mubr.msk.f32.vlgmr.msra.gmra.mxu0 %vm504_vm3, %v691_v61  ;;  %v1257_v61 = vld [vmem:[%s2363_s9 + $0x10] sm:$0xff] }
 0x27a   : > { %v1652_v62 = vpop.f32.mrf.mxu0  ;;  %1682 = vmatprep.mubr.msk.f32.mxu0 %vm1843_vm0, %v1842_v0 }
 0x27c   : > { %v696_v63 = vpop.f32.mrf.mxu0 }
 0x27d   : > { %1683 = vmatmul.mubr.msk.f32.gmra.mxu0 %vm504_vm3, %v696_v63  ;;  %v1487_v63 = vld [vmem:[%s2357_s3 + $0x2] ss:$0 sm:$0xff] }
 0x27e   : > { %v1655_v1 = vpop.f32.mrf.mxu0  ;;  %1685 = vmatprep.mubr.msk.f32.mxu0 %vm1843_vm0, %v1842_v0 }
 0x280   : > { %v701_v2 = vpop.f32.mrf.mxu0 }
 0x281   : > { %1686 = vmatmul.mubr.msk.f32.gmra.mxu0 %vm504_vm3, %v701_v2 }
 0x282   : > { %v1658_v3 = vpop.f32.mrf.mxu0  ;;  %1738 = vmatprep.mubr.msk.f32.mxu0 %vm1843_vm0, %v1842_v0 }
 0x283   : > { %v1492_v3 = vld [vmem:[%s2358_s4 + $0x38] sm:$0xff] }
 0x339   : > { %v799_v4 = vpop.f32.mrf.mxu0 }
 0x33a   : > { %v800_v14 = vadd.f32 %v1459_v9, %v799_v4 }
 0x33b   : > { %v1681_v7 = vpop.f32.mrf.mxu0 }
 0x33c   : > { %v817_v23 = vmul.f32 %v1463_v15, %v800_v14  ;;  %v1493_v14 = vld [vmem:[%s2358_s4 + $0x40] sm:$0x3f] }
 0x33d   : > { %v804_v10 = vpop.f32.mrf.mxu0 }
 0x33e   : > { %v805_v11 = vadd.f32 %v1459_v9, %v804_v10  ;;  %v824_v28 = vadd.f32 %v1466_v25, %v817_v23 }
 0x33f   : > { %v1684_v13 = vpop.f32.mrf.mxu0 }
 0x340   : > { %v818_v18 = vmul.f32 %v1464_v12, %v805_v11  ;;  %v1495_v12 = vld [vmem:[%s2359_s5 + $0x38] sm:$0xff] }
 0x341   : > { %v809_v16 = vpop.f32.mrf.mxu0 }
 0x342   : > { %v810_v19 = vadd.f32 %v1459_v9, %v809_v16  ;;  %v825_v26 = vadd.f32 %v1467_v20, %v818_v18  ;;  %v1491_v9 = vld [vmem:[%s2358_s4 + $0x30] sm:$0xff] }
 0x343   : > { %v1687_v22 = vpop.f32.mrf.mxu0 }
 0x344   : > { %v819_v24 = vmul.f32 %v1465_v17, %v810_v19  ;;  %v1494_v17 = vld [vmem:[%s2359_s5 + $0x30] sm:$0xff]  ;;  %v1496_v19 = vld [vmem:[%s2359_s5 + $0x40] sm:$0x3f] }
 0x346   : > { %v826_v27 = vadd.f32 %v1468_v21, %v819_v24 }
 0x348   : > { %1822 = vtanh.f32 %v826_v27 }
 0x349   : > { %1824 = vtanh.f32 %v825_v26 }
 0x34a   : > { %1826 = vtanh.f32 %v824_v28 }
 0x355   : > { %v1823_v29 = vpop.eup %1822 }
 0x356   : > { %1689 = vmatpush3.msk.msra.mxu1 %vm403_vm1, %v1823_v29  ;;  %v1825_v30 = vpop.eup %1824 }
 0x357   : > { %1690 = vmatprep.subr.mxu1 %v1842_v0  ;;  %v1827_v32 = vpop.eup %1826 }
 0x358   : > { %1691 = vmatpush3.msra.mxu1 %v1825_v30  ;;  %v1054_v30 = vld [vmem:[%s2360_s6] sm:$0xff] }
 0x359   : > { %1692 = vmatprep.subr.mxu1 %v1842_v0 }
 0x35a   : > { %1693 = vmatpush3.msra.mxu1 %v1827_v32  ;;  %v1155_v32 = vld [vmem:[%s2361_s7 + $0x30] sm:$0xff] }
 0x35b   : > { %1695 = vmatmul.mubr.msk.f32.vlgmr.msra.gmra.mxu1 %vm393_vm2, %v1469_v31  ;;  %1703 = vmatprep.subr.mxu1 %v1842_v0  ;;  %v1156_v31 = vld [vmem:[%s2361_s7 + $0x38] sm:$0xff] }
 0x35c   : > { %1697 = vmatprep.mubr.msk.f32.mxu1 %vm1843_vm0, %v1842_v0  ;;  %1704 = vmatpush3.msra.mxu1 %v1485_v33  ;;  %v1056_v33 = vld [vmem:[%s2360_s6 + $0x10] sm:$0x3f] }
 0x35d   : > { %1705 = vmatprep.subr.mxu1 %v1842_v0 }
 0x35e   : > { %1706 = vmatpush3.msra.mxu1 %v1484_v34  ;;  %v1154_v34 = vld [vmem:[%s2361_s7 + $0x28] sm:$0xff] }
 0x35f   : > { %1698 = vmatmul.mubr.msk.f32.gmra.mxu1 %vm393_vm2, %v1470_v35  ;;  %1707 = vmatprep.subr.mxu1 %v1842_v0  ;;  %v1153_v35 = vld [vmem:[%s2361_s7 + $0x20] sm:$0xff] }
 0x360   : > { %1700 = vmatprep.mubr.msk.f32.mxu1 %vm1843_vm0, %v1842_v0  ;;  %1708 = vmatpush3.msra.mxu1 %v1483_v36  ;;  %v1152_v36 = vld [vmem:[%s2361_s7 + $0x18] sm:$0xff] }
 0x361   : > { %1709 = vmatprep.subr.mxu1 %v1842_v0 }
 0x362   : > { %1710 = vmatpush3.msra.mxu1 %v1482_v37  ;;  %v1151_v37 = vld [vmem:[%s2361_s7 + $0x10] sm:$0xff] }
 0x363   : > { %1701 = vmatmul.mubr.msk.f32.gmra.mxu1 %vm393_vm2, %v1471_v38  ;;  %1711 = vmatprep.subr.mxu1 %v1842_v0  ;;  %v1150_v38 = vld [vmem:[%s2361_s7 + $0x8] sm:$0xff] }
 0x364   : > { %1712 = vmatpush3.msra.mxu1 %v1481_v39  ;;  %1723 = vmatprep.mubr.msk.f32.mxu1 %vm1843_vm0, %v1842_v0  ;;  %v1256_v39 = vld [vmem:[%s2363_s9 + $0x8] sm:$0xff] }
 0x365   : > { %1713 = vmatprep.subr.mxu1 %v1842_v0 }
 0x366   : > { %1714 = vmatpush3.msra.mxu1 %v1480_v40  ;;  %v1149_v40 = vld [vmem:[%s2361_s7] sm:$0xff] }
 0x367   : > { %1715 = vmatprep.subr.mxu1 %v1842_v0 }
 0x368   : > { %1716 = vmatpush3.msra.mxu1 %v1479_v41  ;;  %v1255_v41 = vld [vmem:[%s2363_s9] sm:$0xff] }
 0x369   : > { %1717 = vmatprep.subr.mxu1 %v1842_v0 }
 0x36a   : > { %1718 = vmatpush3.msra.mxu1 %v1478_v42 }
 0x36b   : > { %1719 = vmatprep.subr.mxu1 %v1842_v0 }
 0x36c   : > { %1720 = vmatpush3.msra.mxu1 %v1477_v43 }
 0x36d   : > { %1721 = vmatprep.subr.mxu1 %v1842_v0 }
 0x36e   : > { %1722 = vmatpush3.msra.mxu1 %v1476_v44 }
 0x36f   : > { %1776 = vmatprep.subr.mxu1 %v1842_v0 }
 0x41b   : > { %v912_v47 = vpop.f32.mrf.mxu1 }
 0x41c   : > { %1724 = vmatmul.mubr.msk.f32.vlgmr.msra.gmra.mxu1 %vm504_vm3, %v912_v47 }
 0x41d   : > { %v1696_v49 = vpop.f32.mrf.mxu1  ;;  %1726 = vmatprep.mubr.msk.f32.mxu1 %vm1843_vm0, %v1842_v0  ;;  %1777 = vmatpush3.msra.mxu1 %v1264_v54  ;;  %v1501_v54 = vld [vmem:[%s2362_s8] ss:$0 sm:$0xff] }
 0x41e   : > { %1778 = vmatprep.subr.mxu1 %v1842_v0 }
 0x41f   : > { %v917_v50 = vpop.f32.mrf.mxu1  ;;  %1779 = vmatpush3.msra.mxu1 %v1263_v55 }
 0x420   : > { %1727 = vmatmul.mubr.msk.f32.gmra.mxu1 %vm504_vm3, %v917_v50  ;;  %1780 = vmatprep.subr.mxu1 %v1842_v0 }
 0x421   : > { %v1699_v51 = vpop.f32.mrf.mxu1  ;;  %1729 = vmatprep.mubr.msk.f32.mxu1 %vm1843_vm0, %v1842_v0  ;;  %1781 = vmatpush3.msra.mxu1 %v1262_v56 }
 0x422   : > { %1782 = vmatprep.subr.mxu1 %v1842_v0 }
 0x423   : > { %v922_v52 = vpop.f32.mrf.mxu1  ;;  %1783 = vmatpush3.msra.mxu1 %v1261_v57 }
 0x424   : > { %1730 = vmatmul.mubr.msk.f32.gmra.mxu1 %vm504_vm3, %v922_v52  ;;  %1784 = vmatprep.subr.mxu1 %v1842_v0 }
 0x425   : > { %v1702_v53 = vpop.f32.mrf.mxu1  ;;  %1796 = vmatprep.mubr.msk.f32.mxu1 %vm1843_vm0, %v1842_v0  ;;  %1785 = vmatpush3.msra.mxu1 %v1260_v58 }
 0x426   : > { %1786 = vmatprep.subr.mxu1 %v1842_v0 }
 0x427   : > { %1787 = vmatpush3.msra.mxu1 %v1259_v59 }
 0x428   : > { %1788 = vmatprep.subr.mxu1 %v1842_v0 }
 0x429   : > { %1789 = vmatpush3.msra.mxu1 %v1258_v60 }
 0x42a   : > { %1790 = vmatprep.subr.mxu1 %v1842_v0 }
 0x42b   : > { %1791 = vmatpush3.msra.mxu1 %v1257_v61 }
 0x42c   : > { %1792 = vmatprep.subr.mxu1 %v1842_v0 }
 0x42d   : > { %1793 = vmatpush3.msra.mxu1 %v1256_v39 }
 0x42e   : > { %1794 = vmatprep.subr.mxu1 %v1842_v0 }
 0x42f   : > { %1795 = vmatpush3.msra.mxu1 %v1255_v41 }
 0x430   : > { %1797 = vmatmul.mubr.msk.f32.vlgmr.msra.gmra.mxu1 %vm504_vm3, %v1951_v8 }
 0x431   : > { %1799 = vmatprep.mubr.msk.f32.mxu1 %vm1843_vm0, %v1842_v0 }
 0x434   : > { %1800 = vmatmul.mubr.msk.f32.gmra.mxu1 %vm504_vm3, %v1942_v6 }
 0x435   : > { %1802 = vmatprep.mubr.msk.f32.mxu1 %vm1843_vm0, %v1842_v0 }
 0x438   : > { %1803 = vmatmul.mubr.msk.f32.gmra.mxu1 %vm504_vm3, %v1940_v5 }
 0x4dc   : > { %v1020_v62 = vpop.f32.mrf.mxu1 }
 0x4dd   : > { %v1021_v4 = vadd.f32 %v1487_v63, %v1020_v62 }
 0x4de   : > { %v1725_v1 = vpop.f32.mrf.mxu1 }
 0x4df   : > { %v1038_v15 = vmul.f32 %v1491_v9, %v1021_v4 }
 0x4e0   : > { %v1025_v2 = vpop.f32.mrf.mxu1 }
 0x4e1   : > { %v1026_v7 = vadd.f32 %v1487_v63, %v1025_v2  ;;  %v1045_v22 = vadd.f32 %v1494_v17, %v1038_v15 }
 0x4e2   : > { %v1728_v10 = vpop.f32.mrf.mxu1 }
 0x4e3   : > { %v1039_v11 = vmul.f32 %v1492_v3, %v1026_v7 }
 0x4e4   : > { %v1030_v13 = vpop.f32.mrf.mxu1 }
 0x4e5   : > { %v1031_v16 = vadd.f32 %v1487_v63, %v1030_v13  ;;  %v1046_v18 = vadd.f32 %v1495_v12, %v1039_v11 }
 0x4e6   : > { %v1731_v20 = vpop.f32.mrf.mxu1 }
 0x4e7   : > { %v1040_v21 = vmul.f32 %v1493_v14, %v1031_v16  ;;  %1828 = vtanh.f32 %v1046_v18 }
 0x4e9   : > { %v1047_v23 = vadd.f32 %v1496_v19, %v1040_v21 }
 0x4eb   : > { %1830 = vtanh.f32 %v1047_v23 }
 0x4ec   : > { %1832 = vtanh.f32 %v1045_v22 }
 0x4f0   : > { %v1339_v5 = vpop.f32.mrf.mxu1 }
 0x4f2   : > { %v1798_v49 = vpop.f32.mrf.mxu1 }
 0x4f4   : > { %v1829_v24 = vpop.eup %1828  ;;  %v1344_v50 = vpop.f32.mrf.mxu1 }
 0x4f5   : > { %v1052_v28 = vadd.f32 %v1829_v24, %v2031_v46  ;;  %v1157_v46 = vld [vmem:[%s2361_s7 + $0x40] sm:$0xff] }
 0x4f6   : > { %v1801_v51 = vpop.f32.mrf.mxu1 }
 0x4f8   : > { %v1831_v25 = vpop.eup %1830  ;;  %v1349_v52 = vpop.f32.mrf.mxu1 }
 0x4f9   : > { %v1053_v26 = vadd.f32 %v1831_v25, %v2027_v45  ;;  %v1833_v27 = vpop.eup %1832  ;;  %v1158_v45 = vld [vmem:[%s2361_s7 + $0x48] sm:$0xff] }
 0x4fa   : > { %v1051_v29 = vadd.f32 %v1833_v27, %v2038_v48  ;;  %v1055_v48 = vld [vmem:[%s2360_s6 + $0x8] sm:$0xff]  ;;  %v1804_v53 = vpop.f32.mrf.mxu1 }
 0x4fb   : > { %1733 = vmatpush3.msk.msra.mxu0 %vm403_vm1, %v1053_v26 }
 0x4fc   : > { %1734 = vmatprep.subr.mxu0 %v1842_v0 }
 0x4fd   : > { %1735 = vmatpush3.msra.mxu0 %v1052_v28 }
 0x4fe   : > { %1736 = vmatprep.subr.mxu0 %v1842_v0 }
 0x4ff   : > { %1737 = vmatpush3.msra.mxu0 %v1051_v29 }
 0x500   : > { %1739 = vmatmul.mubr.msk.f32.vlgmr.msra.gmra.mxu0 %vm393_vm2, %v1054_v30  ;;  %1747 = vmatprep.subr.mxu0 %v1842_v0 }
 0x501   : > { %1741 = vmatprep.mubr.msk.f32.mxu0 %vm1843_vm0, %v1842_v0  ;;  %1748 = vmatpush3.msra.mxu0 %v1158_v45 }
 0x502   : > { %1749 = vmatprep.subr.mxu0 %v1842_v0 }
 0x503   : > { %1750 = vmatpush3.msra.mxu0 %v1157_v46 }
 0x504   : > { %1742 = vmatmul.mubr.msk.f32.gmra.mxu0 %vm393_vm2, %v1055_v48  ;;  %1751 = vmatprep.subr.mxu0 %v1842_v0 }
 0x505   : > { %1744 = vmatprep.mubr.msk.f32.mxu0 %vm1843_vm0, %v1842_v0  ;;  %1752 = vmatpush3.msra.mxu0 %v1156_v31 }
 0x506   : > { %1753 = vmatprep.subr.mxu0 %v1842_v0 }
 0x507   : > { %1754 = vmatpush3.msra.mxu0 %v1155_v32 }
 0x508   : > { %1745 = vmatmul.mubr.msk.f32.gmra.mxu0 %vm393_vm2, %v1056_v33  ;;  %1755 = vmatprep.subr.mxu0 %v1842_v0 }
 0x509   : > { %1756 = vmatpush3.msra.mxu0 %v1154_v34  ;;  %1767 = vmatprep.mubr.msk.f32.mxu0 %vm1843_vm0, %v1842_v0 }
 0x50a   : > { %1757 = vmatprep.subr.mxu0 %v1842_v0 }
 0x50b   : > { %1758 = vmatpush3.msra.mxu0 %v1153_v35 }
 0x50c   : > { %1759 = vmatprep.subr.mxu0 %v1842_v0 }
 0x50d   : > { %1760 = vmatpush3.msra.mxu0 %v1152_v36 }
 0x50e   : > { %1761 = vmatprep.subr.mxu0 %v1842_v0 }
 0x50f   : > { %1762 = vmatpush3.msra.mxu0 %v1151_v37 }
 0x510   : > { %1763 = vmatprep.subr.mxu0 %v1842_v0 }
 0x511   : > { %1764 = vmatpush3.msra.mxu0 %v1150_v38 }
 0x512   : > { %1765 = vmatprep.subr.mxu0 %v1842_v0 }
 0x513   : > { %1766 = vmatpush3.msra.mxu0 %v1149_v40 }
 0x5c0   : > { %v1135_v42 = vpop.f32.mrf.mxu0 }
 0x5c1   : > { %1768 = vmatmul.mubr.msk.f32.vlgmr.msra.gmra.mxu0 %vm504_vm3, %v1135_v42 }
 0x5c2   : > { %v1740_v43 = vpop.f32.mrf.mxu0  ;;  %1770 = vmatprep.mubr.msk.f32.mxu0 %vm1843_vm0, %v1842_v0 }
 0x5c4   : > { %v1140_v8 = vpop.f32.mrf.mxu0 }
 0x5c5   : > { %1771 = vmatmul.mubr.msk.f32.gmra.mxu0 %vm504_vm3, %v1140_v8 }
 0x5c6   : > { %v1743_v44 = vpop.f32.mrf.mxu0  ;;  %1773 = vmatprep.mubr.msk.f32.mxu0 %vm1843_vm0, %v1842_v0  ;;  %v1508_v0 = vld [vmem:[%s2364_s10] ss:$0 sm:$0xff] }
 0x5c8   : > { %v1145_v6 = vpop.f32.mrf.mxu0 }
 0x5c9   : > { %1774 = vmatmul.mubr.msk.f32.gmra.mxu0 %vm504_vm3, %v1145_v6 }
 0x5ca   : > { %v1746_v47 = vpop.f32.mrf.mxu0 }
 0x681   : > { %v1241_v55 = vpop.f32.mrf.mxu0 }
 0x682   : > { %v1242_v56 = vadd.f32 %v1501_v54, %v1241_v55 }
 0x683   : > { %v1769_v57 = vpop.f32.mrf.mxu0 }
 0x684   : > { %v1353_v58 = vadd.f32 %v1339_v5, %v1242_v56 }
 0x685   : > { %v1246_v59 = vpop.f32.mrf.mxu0 }
 0x686   : > { %v1363_v60 = vadd.f32 %v1508_v0, %v1353_v58  ;;  %v1247_v61 = vadd.f32 %v1501_v54, %v1246_v59 }
 0x687   : > { %v1772_v62 = vpop.f32.mrf.mxu0 }
 0x688   : > { %1367 = vst.msk [vmem:[%s386_s16] sm:$0xff] %vm1366_vm4, %v1363_v60  ;;  %v1354_v63 = vadd.f32 %v1344_v50, %v1247_v61 }
 0x689   : > { %v1251_v1 = vpop.f32.mrf.mxu0 }
 0x68a   : > { %v1364_v2 = vadd.f32 %v1508_v0, %v1354_v63  ;;  %v1252_v3 = vadd.f32 %v1501_v54, %v1251_v1 }
 0x68b   : > { %v1775_v4 = vpop.f32.mrf.mxu0 }
 0x68c   : > { %1368 = vst.msk [vmem:[%s386_s16 + $0x8] sm:$0xff] %vm1366_vm4, %v1364_v2  ;;  %v1355_v7 = vadd.f32 %v1349_v52, %v1252_v3 }
 0x68e   : > { %v1365_v9 = vadd.f32 %v1508_v0, %v1355_v7 }
 0x690   : > { %1370 = vst.msk [vmem:[%s386_s16 + $0x10] sm:$0x3f] %vm1369_vm5, %v1365_v9 }
 0x691 PF: > { %s21_s17 = sadd.s32 1, %s1840_s17  }
 0x692   : > { %p18_p4 = scmp.ge.s32.totalorder %s21_s17, 4  }
 0x694   :  { %20 = sbr.rel (!%p18_p4) target bundleno = 1 (0x1), region = 104 }

</bundles_post_ra>
